<compile_context>
chip_gen: v7x
topology: tpu7x:2x2x1
jax: 0.10.0
libtpu: 0.0.40
codegen_flags: <defaults>
</compile_context>

<pallas_src>
import math

import jax
import jax.numpy as jnp
from jax.experimental import pallas as pl
from jax.experimental.pallas import tpu as pltpu

_LANE = 128
_TARGET_BLOCK_BYTES = 2 << 20   # ~2 MiB/block: 2 arrays x 2 buffers ≈ 8 MiB VMEM
_MAX_LANE_WIDTH = 2048          # keep one row <= 8 KiB (f32); rows carry the volume


def _flatten_copy_kernel(x_ref, o_ref):
    # Pure lane-dense copy of one (r_tile, L) block.
    o_ref[...] = x_ref[...]


def _sublane_multiple(dtype):
    # Sub-32-bit dtypes pack along sublanes: 8 rows for 32-bit, 16 for bf16,
    # 32 for int8/fp8 -> keeps vld/vst on full packed vregs.
    bits = jnp.dtype(dtype).itemsize * 8
    return max(8, 256 // bits)


def _choose_slab(total, n, d):
    # Prefer one flat lane-dense slab (decouples tiling from the N/D split and
    # guarantees unmasked stores); fall back to (n, d) when total % 128 != 0
    # (d == full extent is always a valid block last dim).
    if total % _LANE == 0:
        lane = _LANE
        while lane * 2 <= _MAX_LANE_WIDTH and total % (lane * 2) == 0:
            lane *= 2
        return total // lane, lane
    return n, d


def _choose_row_tile(rows, lane, itemsize, pack):
    # Budget-clamped, pack-aligned row tile; never exceeds _TARGET_BLOCK_BYTES
    # (unless the full extent itself is tiny), so scoped VMEM can't blow up.
    row_bytes = lane * itemsize
    max_rows = max(1, _TARGET_BLOCK_BYTES // row_bytes)
    if rows <= pack:
        return rows                                   # full extent: always valid
    r_tile = max(pack, (max_rows // pack) * pack)
    r_tile = min(r_tile, (rows // pack) * pack)
    # v7x has two TensorCores: prefer >= 2 blocks along the parallel axis.
    if pl.cdiv(rows, r_tile) < 2:
        half = pl.cdiv(pl.cdiv(rows, 2), pack) * pack
        r_tile = max(pack, min(r_tile, half))
    return r_tile


def _flatten_copy_pallas(x2):
    rows0, cols0 = x2.shape
    total = rows0 * cols0
    itemsize = jnp.dtype(x2.dtype).itemsize
    pack = _sublane_multiple(x2.dtype)

    rows, lane = _choose_slab(total, rows0, cols0)
    slab = jnp.reshape(x2, (rows, lane))              # metadata-only

    r_tile = _choose_row_tile(rows, lane, itemsize, pack)
    grid = (pl.cdiv(rows, r_tile),)                   # tail block (if any) is masked

    out = pl.pallas_call(
        _flatten_copy_kernel,
        grid=grid,
        in_specs=[pl.BlockSpec((r_tile, lane), lambda i: (i, 0))],
        out_specs=pl.BlockSpec((r_tile, lane), lambda i: (i, 0)),
        out_shape=jax.ShapeDtypeStruct((rows, lane), x2.dtype),
        compiler_params=pltpu.CompilerParams(
            dimension_semantics=("parallel",)),
    )(slab)
    return jnp.reshape(out, (rows0, cols0))           # metadata-only


def flatten_forward(x, force_copy=False):
    """Pallas equivalent of FlattenLayer.forward: (N, ...) -> (N, prod(...)).

    Default path is the metadata-only reshape (flatten of a contiguous
    row-major tensor moves no data — the fastest possible implementation on
    every TPU generation).  Set force_copy=True to materialize the result via
    the tiled Pallas copy kernel above.
    """
    n = x.shape[0]
    d = int(math.prod(x.shape[1:]))
    x2 = jnp.reshape(x, (n, d))                       # == torch x.view(N, -1)
    if not force_copy:
        return x2
    return _flatten_copy_pallas(x2)


if __name__ == "__main__":
    key = jax.random.PRNGKey(0)
    # Small shapes consistent with the module's forward: (N, C, H, W).
    N, C, H, W = 2, 4, 16, 16
    x = jax.random.normal(key, (N, C, H, W), jnp.float32)

    ref = jnp.reshape(x, (N, -1))                     # == torch x.view(N, -1)

    # Exercise the Pallas copy kernel.
    out = jax.block_until_ready(flatten_forward(x, force_copy=True))
    assert out.shape == (N, C * H * W), out.shape
    assert out.dtype == x.dtype
    assert jnp.array_equal(out, ref), float(jnp.max(jnp.abs(out - ref)))

    # Zero-copy default path (the recommended one) must match too.
    fast = jax.block_until_ready(flatten_forward(x))
    assert fast.shape == (N, C * H * W)
    assert jnp.array_equal(fast, ref)

    print("KERNEL_OK")
</pallas_src>

<mosaic_0001>
module attributes {stable_mosaic.version = 11 : i64} {
  func.func @_flatten_copy_kernel(%arg0: i32, %arg1: memref<1x2048xf32, #tpu.memory_space<vmem>>, %arg2: memref<1x2048xf32, #tpu.memory_space<vmem>>) attributes {dimension_semantics = [#tpu.dimension_semantics<parallel>], iteration_bounds = array<i64: 1>, scalar_prefetch = 0 : i64, scratch_operands = 0 : i64, tpu.core_type = #tpu.core_type<tc>, window_params = [{transform_indices = @transform_0, window_bounds = array<i64: 1, 2048>}, {transform_indices = @transform_1, window_bounds = array<i64: 1, 2048>}]} {
    %c0 = arith.constant 0 : index
    %c0_0 = arith.constant 0 : index
    %0 = vector.load %arg1[%c0, %c0_0] : memref<1x2048xf32, #tpu.memory_space<vmem>>, vector<1x2048xf32>
    %c0_1 = arith.constant 0 : index
    %c0_2 = arith.constant 0 : index
    %1 = vector.load %arg2[%c0_1, %c0_2] : memref<1x2048xf32, #tpu.memory_space<vmem>>, vector<1x2048xf32>
    tpu.vector_store %arg2[%c0_1, %c0_2], %0 {strides = array<i32>} : memref<1x2048xf32, #tpu.memory_space<vmem>>, vector<1x2048xf32>,
    return
  }
  func.func @transform_0(%arg0: i32) -> (i32, i32) {
    %c0_i32 = arith.constant 0 : i32
    %c0_i32_0 = arith.constant 0 : i32
    return %arg0, %c0_i32 : i32, i32
  }
  func.func @transform_1(%arg0: i32) -> (i32, i32) {
    %c0_i32 = arith.constant 0 : i32
    %c0_i32_0 = arith.constant 0 : i32
    return %arg0, %c0_i32 : i32, i32
  }
}

</mosaic_0001>

<bundles_post_ra>
// kernel: tpu_custom_call.1
= control target key start
LH: loop header
LB: loop body
LE: loop exit
PB: predicated region body
PF: predicated region fallthrough
CT: control target
= control target key end

     0   :  { %6 = vsyncpa [#allocation3], 0  ;;  %s126_s0 = inlined_call_operand.hbm [shape: f32[1,2048], index: 0, kind: input, shape index: {}]   ;;  %s127_s1 = inlined_call_operand.hbm [shape: f32[1,2048], index: 1, kind: output, shape index: {}]  }
   0x1   :  { %7 = vsyncpa [#allocation4], 0  ;;  %s90_s6 = smov [#allocation2]   ;;  %s42_s10 = scalar_lea.hbm %s126_s0, 256 }
   0x2   :  { %s14_s7 = sshll.u32 %s90_s6, 4  ;;  %p43_p0 = scmp.ne.s32.totalorder %s126_s0, %s42_s10  ;;  %s15_s7 = int_to_ptr.vmem [resolvable:$true] %s14_s7 }
   0x3   :  { %p46_p1 = scmp.lt.u32.totalorder %s42_s10, %s126_s0 }
   0x5   :  { %p48_p2 = pnand %p46_p1, %p43_p0 }
   0x7   :  { %51 = shalt.err (!%p48_p2)
}
   0x8   :  { %s52_s15 = scalar_lea.vmem %s15_s7, 256  ;;  %p57_p4 = scmp.lt.s32.totalorder %s15_s7, %s15_s7 }
   0x9   :  { %p53_p3 = scmp.ne.s32.totalorder %s15_s7, %s52_s15  ;;  %p58_p5 = scmp.lt.s32.totalorder %s52_s15, %s52_s15 }
   0xb   :  { %p59_p6 = por %p58_p5, %p57_p4 }
   0xd   :  { %p60_p7 = pnand %p59_p6, %p53_p3 }
   0xf   :  { %63 = shalt.err (!%p60_p7)
}
  0x10   :  { %17 = dma.hbm_to_vmem [thread:$0]  %s126_s0, 256, %s15_s7, [#allocation3]  }
  0x11   :  { %86 = dma.done.wait [#allocation3], 256  }
  0x12   :  { %87 = vsyncadd [#allocation3], 4294967040  ;;  %s91_s18 = smov [#allocation5]   ;;  %v21_v0 = vld [vmem:[#allocation2] sm:$0xff]  ;;  %v22_v1 = vld [vmem:[#allocation2 + $0x8] sm:$0xff] }
  0x13   :  { %s31_s19 = sshll.u32 %s91_s18, 4  ;;  %23 = vst [vmem:[#allocation5] sm:$0xff] %v21_v0  ;;  %24 = vst [vmem:[#allocation5 + $0x8] sm:$0xff] %v22_v1  ;;  %s32_s19 = int_to_ptr.vmem [resolvable:$true] %s31_s19 }
  0x14   :  { %s64_s20 = scalar_lea.vmem %s32_s19, 256  ;;  %p69_p9 = scmp.lt.s32.totalorder %s32_s19, %s32_s19 }
  0x15   :  { %p65_p8 = scmp.ne.s32.totalorder %s32_s19, %s64_s20  ;;  %p70_p10 = scmp.lt.s32.totalorder %s64_s20, %s64_s20 }
  0x17   :  { %p71_p11 = por %p70_p10, %p69_p9 }
  0x19   :  { %p72_p12 = pnand %p71_p11, %p65_p8 }
  0x1b   :  { %75 = shalt.err (!%p72_p12)
}
  0x1c   :  { %s76_s0 = scalar_lea.hbm %s127_s1, 256 }
  0x1d   :  { %p77_p13 = scmp.ne.s32.totalorder %s127_s1, %s76_s0  ;;  %p80_p0 = scmp.lt.u32.totalorder %s76_s0, %s127_s1 }
  0x1f   :  { %p82_p1 = pnand %p80_p0, %p77_p13 }
  0x21   :  { %85 = shalt.err (!%p82_p1)
}
  0x22   :  { %34 = dma.vmem_to_hbm [thread:$0]  %s32_s19, 256, %s127_s1, [#allocation4]  }
  0x23   :  { %88 = dma.done.wait [#allocation4], 256  }
  0x24   :  { %89 = vsyncadd [#allocation4], 4294967040 }
  0x25   :  { %38 = vsyncpa [#allocation3], 1 }
  0x26   :  { %39 = vsyncpa [#allocation4], 1 }

</bundles_post_ra>
